<compile_context>
chip_gen: v7x
topology: tpu7x:2x2x1
jax: 0.10.0
libtpu: 0.0.40
codegen_flags: <defaults>
</compile_context>

<pallas_src>
import functools

import jax
import jax.numpy as jnp
from jax.experimental import pallas as pl
from jax.experimental.pallas import tpu as pltpu


# ----------------------------- Pallas kernels -------------------------------

def _input_proj_kernel(x_ref, w_ref, b_ref, out_ref):
    # (RB, nIn) @ (nIn, 8H) + (1, 8H) -> (RB, 8H), accumulated in f32.
    out_ref[...] = (
        jnp.dot(x_ref[...], w_ref[...], preferred_element_type=jnp.float32)
        + b_ref[...]
    ).astype(out_ref.dtype)


def _apply_gates(gates, c, H):
    # PyTorch gate order [i, f, g, o].
    # NOTE: H < 128 slices cut inside a single lane tile; at production sizes
    # pick H as a multiple of 128 so each gate is lane-aligned (perf review).
    i = jax.nn.sigmoid(gates[:, 0:H])
    f = jax.nn.sigmoid(gates[:, H:2 * H])
    g = jnp.tanh(gates[:, 2 * H:3 * H])
    o = jax.nn.sigmoid(gates[:, 3 * H:4 * H])
    c_new = f * c + i * g
    h_new = o * jnp.tanh(c_new)
    return h_new, c_new


def _bilstm_recurrent_kernel(gf_ref, gb_ref, whh_f_ref, whh_b_ref,
                             hf_out_ref, hb_out_ref,
                             hf, cf, hb, cb, *, H, TT):
    """Grid = (T // TT,).  gf_ref: TT precomputed forward gate slabs (ascending
    time).  gb_ref: TT gate slabs of the mirrored time block (backward dir).
    Hidden/cell states carry across grid steps in VMEM scratch."""
    blk = pl.program_id(0)

    @pl.when(blk == 0)
    def _():
        hf[...] = jnp.zeros_like(hf)
        cf[...] = jnp.zeros_like(cf)
        hb[...] = jnp.zeros_like(hb)
        cb[...] = jnp.zeros_like(cb)

    cdt = whh_f_ref.dtype  # matmul compute dtype (f32 or bf16)

    def step(t, carry):
        # ---- forward direction: local row t (global time blk*TT + t) ----
        gates_f = gf_ref[t] + jnp.dot(hf[...].astype(cdt), whh_f_ref[...],
                                      preferred_element_type=jnp.float32)
        h_new, c_new = _apply_gates(gates_f, cf[...], H)
        hf[...] = h_new
        cf[...] = c_new
        hf_out_ref[t] = h_new

        # ---- backward direction: local row TT-1-t of the mirrored block ----
        r = TT - 1 - t
        gates_b = gb_ref[r] + jnp.dot(hb[...].astype(cdt), whh_b_ref[...],
                                      preferred_element_type=jnp.float32)
        h_new_b, c_new_b = _apply_gates(gates_b, cb[...], H)
        hb[...] = h_new_b
        cb[...] = c_new_b
        hb_out_ref[r] = h_new_b
        return carry

    jax.lax.fori_loop(0, TT, step, 0, unroll=True)

    # TODO(synk): on v7x, run the forward/backward recurrences on separate
    # TensorCores (pl.core_map over pltpu.create_tensorcore_mesh) for ~2x on
    # the latency-bound recurrent portion.


def _embedding_kernel(hf_ref, hb_ref, wf_ref, wb_ref, b_ref, out_ref):
    # out = hf @ W_emb_top + hb @ W_emb_bot + b  (== concat([hf,hb]) @ W_emb + b)
    cdt = wf_ref.dtype
    acc = jnp.dot(hf_ref[...].astype(cdt), wf_ref[...],
                  preferred_element_type=jnp.float32)
    acc = acc + jnp.dot(hb_ref[...].astype(cdt), wb_ref[...],
                        preferred_element_type=jnp.float32)
    out_ref[...] = (acc + b_ref[...]).astype(out_ref.dtype)


# ------------------------------ wrapper --------------------------------------

def _largest_divisor_leq(n, cap):
    d = max(1, min(n, cap))
    while n % d:
        d -= 1
    return d


def _pick_row_block(m, cap=512):
    if m <= cap:
        return m
    for rb in range(cap - cap % 8, 7, -8):
        if m % rb == 0:
            return rb
    return m  # fallback: single full block


def bidirectional_lstm(x, params, *, compute_dtype=jnp.float32, time_tile=16):
    T, B, nIn = x.shape
    H = params["whh_f"].shape[0]
    nOut = params["w_emb"].shape[1]
    G = 4 * H
    cdt = compute_dtype

    # -------- weight prep (plain JAX glue, runs once per call) --------
    # Both directions' input-projection weights stacked along N -> one matmul.
    w_ih_both = jnp.concatenate([params["wih_f"], params["wih_b"]],
                                axis=1).astype(cdt)                    # (nIn, 8H)
    b_both = jnp.concatenate([params["b_f"], params["b_b"]], axis=1)   # (1, 8H) f32
    whh_f = params["whh_f"].astype(cdt)                                # (H, 4H)
    whh_b = params["whh_b"].astype(cdt)
    w_emb_f = params["w_emb"][:H].astype(cdt)                          # (H, nOut)
    w_emb_b = params["w_emb"][H:].astype(cdt)                          # (H, nOut)
    b_emb = params["b_emb"]                                            # (1, nOut) f32

    M = T * B

    # -------- 1) hoisted, time-independent input projection --------
    x2d = x.reshape(M, nIn).astype(cdt)
    RB = _pick_row_block(M)
    gates_in2d = pl.pallas_call(
        _input_proj_kernel,
        grid=(M // RB,),
        in_specs=[
            pl.BlockSpec((RB, nIn), lambda i: (i, 0)),
            pl.BlockSpec((nIn, 2 * G), lambda i: (0, 0)),
            pl.BlockSpec((1, 2 * G), lambda i: (0, 0)),
        ],
        out_specs=pl.BlockSpec((RB, 2 * G), lambda i: (i, 0)),
        out_shape=jax.ShapeDtypeStruct((M, 2 * G), jnp.float32),
        compiler_params=pltpu.CompilerParams(
            dimension_semantics=("parallel",)),
    )(x2d, w_ih_both, b_both)
    gates_in = gates_in2d.reshape(T, B, 2 * G)  # cols [0,4H)=fwd, [4H,8H)=bwd

    # -------- 2) recurrent part, tiled over time blocks --------
    TT = _largest_divisor_leq(T, time_tile)
    Tb = T // TT

    hf, hb = pl.pallas_call(
        functools.partial(_bilstm_recurrent_kernel, H=H, TT=TT),
        grid=(Tb,),
        in_specs=[
            # forward gate slabs: time block blk, column block 0 (lanes [0,4H))
            pl.BlockSpec((TT, B, G), lambda i: (i, 0, 0)),
            # backward gate slabs: mirrored time block, column block 1 ([4H,8H))
            pl.BlockSpec((TT, B, G), lambda i: (Tb - 1 - i, 0, 1)),
            pl.BlockSpec((H, G), lambda i: (0, 0)),   # W_hh fwd (constant)
            pl.BlockSpec((H, G), lambda i: (0, 0)),   # W_hh bwd (constant)
        ],
        out_specs=[
            pl.BlockSpec((TT, B, H), lambda i: (i, 0, 0)),
            pl.BlockSpec((TT, B, H), lambda i: (Tb - 1 - i, 0, 0)),
        ],
        out_shape=[
            jax.ShapeDtypeStruct((T, B, H), jnp.float32),
            jax.ShapeDtypeStruct((T, B, H), jnp.float32),
        ],
        scratch_shapes=[pltpu.VMEM((B, H), jnp.float32) for _ in range(4)],
        compiler_params=pltpu.CompilerParams(
            dimension_semantics=("arbitrary",)),   # strict time recurrence
    )(gates_in, gates_in, whh_f, whh_b)

    # -------- 3) embedding Linear(2H -> nOut), no concat / no HBM round trip --------
    hf2d = hf.reshape(M, H)
    hb2d = hb.reshape(M, H)
    RB2 = _pick_row_block(M)
    out2d = pl.pallas_call(
        _embedding_kernel,
        grid=(M // RB2,),
        in_specs=[
            pl.BlockSpec((RB2, H), lambda i: (i, 0)),
            pl.BlockSpec((RB2, H), lambda i: (i, 0)),
            pl.BlockSpec((H, nOut), lambda i: (0, 0)),
            pl.BlockSpec((H, nOut), lambda i: (0, 0)),
            pl.BlockSpec((1, nOut), lambda i: (0, 0)),
        ],
        out_specs=pl.BlockSpec((RB2, nOut), lambda i: (i, 0)),
        out_shape=jax.ShapeDtypeStruct((M, nOut), jnp.float32),
        compiler_params=pltpu.CompilerParams(
            dimension_semantics=("parallel",)),
    )(hf2d, hb2d, w_emb_f, w_emb_b, b_emb)

    return out2d.reshape(T, B, nOut)


# --------------------------- reference (pure JAX) -----------------------------

def _lstm_ref_dir(x, w_ih, w_hh, b, H, reverse):
    T, B, _ = x.shape
    xs = x[::-1] if reverse else x

    def step(carry, xt):
        h, c = carry
        gates = xt @ w_ih + h @ w_hh + b
        i = jax.nn.sigmoid(gates[:, 0:H])
        f = jax.nn.sigmoid(gates[:, H:2 * H])
        g = jnp.tanh(gates[:, 2 * H:3 * H])
        o = jax.nn.sigmoid(gates[:, 3 * H:4 * H])
        c = f * c + i * g
        h = o * jnp.tanh(c)
        return (h, c), h

    init = (jnp.zeros((B, H), jnp.float32), jnp.zeros((B, H), jnp.float32))
    _, hs = jax.lax.scan(step, init, xs)
    return hs[::-1] if reverse else hs


def bidirectional_lstm_ref(x, params):
    H = params["whh_f"].shape[0]
    hf = _lstm_ref_dir(x, params["wih_f"], params["whh_f"], params["b_f"], H, False)
    hb = _lstm_ref_dir(x, params["wih_b"], params["whh_b"], params["b_b"], H, True)
    rec = jnp.concatenate([hf, hb], axis=-1)
    T, B, h2 = rec.shape
    out = rec.reshape(T * B, h2) @ params["w_emb"] + params["b_emb"]
    return out.reshape(T, B, -1)


# ------------------------------- main -----------------------------------------

def init_params(key, nIn, H, nOut):
    ks = jax.random.split(key, 10)
    s = 1.0 / jnp.sqrt(H)
    u = lambda k, shape: jax.random.uniform(k, shape, jnp.float32, -s, s)
    return {
        # forward direction (weights stored transposed: (in, 4H))
        "wih_f": u(ks[0], (nIn, 4 * H)),
        "whh_f": u(ks[1], (H, 4 * H)),
        "b_f":   (u(ks[2], (1, 4 * H)) + u(ks[3], (1, 4 * H))),  # b_ih + b_hh
        # backward direction
        "wih_b": u(ks[4], (nIn, 4 * H)),
        "whh_b": u(ks[5], (H, 4 * H)),
        "b_b":   (u(ks[6], (1, 4 * H)) + u(ks[7], (1, 4 * H))),
        # embedding Linear(2H -> nOut), stored transposed
        "w_emb": u(ks[8], (2 * H, nOut)),
        "b_emb": u(ks[9], (1, nOut)),
    }


if __name__ == "__main__":
    T, B, nIn, H, nOut = 8, 2, 16, 32, 16

    key = jax.random.PRNGKey(0)
    kx, kp = jax.random.split(key)
    x = jax.random.normal(kx, (T, B, nIn), jnp.float32)
    params = init_params(kp, nIn, H, nOut)

    ref = bidirectional_lstm_ref(x, params)

    # f32 matmul path -- tight check against the pure-JAX reference.
    out_f32 = jax.block_until_ready(
        bidirectional_lstm(x, params, compute_dtype=jnp.float32))
    assert out_f32.shape == (T, B, nOut)
    assert jnp.allclose(out_f32, ref, rtol=1e-3, atol=1e-3), "f32 mismatch vs reference"

    # bf16 matmul path (v6e/v7x MXU-friendly) -- f32 accumulation/state, looser check.
    out_bf16 = jax.block_until_ready(
        bidirectional_lstm(x, params, compute_dtype=jnp.bfloat16))
    assert out_bf16.shape == (T, B, nOut)
    assert jnp.allclose(out_bf16, ref, rtol=5e-2, atol=5e-2), "bf16 mismatch vs reference"

    print("KERNEL_OK")
</pallas_src>

<mosaic_0001>
module attributes {stable_mosaic.version = 11 : i64} {
  func.func @_input_proj_kernel(%arg0: i32, %arg1: memref<16x16xf32, #tpu.memory_space<vmem>>, %arg2: memref<16x256xf32, #tpu.memory_space<vmem>>, %arg3: memref<1x256xf32, #tpu.memory_space<vmem>>, %arg4: memref<16x256xf32, #tpu.memory_space<vmem>>) attributes {dimension_semantics = [#tpu.dimension_semantics<parallel>], iteration_bounds = array<i64: 1>, scalar_prefetch = 0 : i64, scratch_operands = 0 : i64, tpu.core_type = #tpu.core_type<tc>, window_params = [{transform_indices = @transform_0, window_bounds = array<i64: 16, 16>}, {pipeline_mode = #tpu.pipeline_mode<synchronous>, transform_indices = @transform_1, window_bounds = array<i64: 16, 256>}, {pipeline_mode = #tpu.pipeline_mode<synchronous>, transform_indices = @transform_2, window_bounds = array<i64: 1, 256>}, {transform_indices = @transform_3, window_bounds = array<i64: 16, 256>}]} {
    %c0 = arith.constant 0 : index
    %c0_0 = arith.constant 0 : index
    %0 = vector.load %arg1[%c0, %c0_0] : memref<16x16xf32, #tpu.memory_space<vmem>>, vector<16x16xf32>
    %c0_1 = arith.constant 0 : index
    %c0_2 = arith.constant 0 : index
    %1 = vector.load %arg2[%c0_1, %c0_2] : memref<16x256xf32, #tpu.memory_space<vmem>>, vector<16x256xf32>
    %cst = arith.constant dense<0.000000e+00> : vector<16x256xf32>
    %2 = tpu.matmul %0, %1, %cst {dimension_numbers = #tpu.dot_dimension_numbers<[1], [0], [0], [1], [0, 0, 1, 1], [], []>} : vector<16x16xf32>, vector<16x256xf32>, vector<16x256xf32> -> vector<16x256xf32>
    %c0_3 = arith.constant 0 : index
    %c0_4 = arith.constant 0 : index
    %3 = vector.load %arg3[%c0_3, %c0_4] : memref<1x256xf32, #tpu.memory_space<vmem>>, vector<1x256xf32>
    %4 = vector.broadcast %3 : vector<1x256xf32> to vector<16x256xf32>
    %5 = arith.addf %2, %4 : vector<16x256xf32>
    %c0_5 = arith.constant 0 : index
    %c0_6 = arith.constant 0 : index
    %6 = vector.load %arg4[%c0_5, %c0_6] : memref<16x256xf32, #tpu.memory_space<vmem>>, vector<16x256xf32>
    tpu.vector_store %arg4[%c0_5, %c0_6], %5 {strides = array<i32>} : memref<16x256xf32, #tpu.memory_space<vmem>>, vector<16x256xf32>,
    return
  }
  func.func @transform_0(%arg0: i32) -> (i32, i32) {
    %c0_i32 = arith.constant 0 : i32
    %c0_i32_0 = arith.constant 0 : i32
    return %arg0, %c0_i32 : i32, i32
  }
  func.func @transform_1(%arg0: i32) -> (i32, i32) {
    %c0_i32 = arith.constant 0 : i32
    %c0_i32_0 = arith.constant 0 : i32
    %c0_i32_1 = arith.constant 0 : i32
    return %c0_i32, %c0_i32_0 : i32, i32
  }
  func.func @transform_2(%arg0: i32) -> (i32, i32) {
    %c0_i32 = arith.constant 0 : i32
    %c0_i32_0 = arith.constant 0 : i32
    %c0_i32_1 = arith.constant 0 : i32
    return %c0_i32, %c0_i32_0 : i32, i32
  }
  func.func @transform_3(%arg0: i32) -> (i32, i32) {
    %c0_i32 = arith.constant 0 : i32
    %c0_i32_0 = arith.constant 0 : i32
    return %arg0, %c0_i32 : i32, i32
  }
}

</mosaic_0001>

<bundles_post_ra>
// kernel: tpu_custom_call.1
= control target key start
LH: loop header
LB: loop body
LE: loop exit
PB: predicated region body
PF: predicated region fallthrough
CT: control target
= control target key end

     0   :  { %8 = vsyncpa [#allocation3], 0  ;;  %s328_s0 = inlined_call_operand.hbm [shape: f32[16,16], index: 0, kind: input, shape index: {}]   ;;  %s329_s1 = inlined_call_operand.hbm [shape: f32[16,256], index: 1, kind: input, shape index: {}]   ;;  %s330_s2 = inlined_call_operand.vmem [shape: f32[1,256], index: 2, kind: input, shape index: {}]   ;;  %s331_s3 = inlined_call_operand.hbm [shape: f32[16,256], index: 3, kind: output, shape index: {}]  }
   0x1   :  { %9 = vsyncpa [#allocation6], 0 }
   0x2   :  { %10 = vsyncpa [#allocation4], 0  ;;  %s255_s12 = smov [#allocation2]   ;;  %s183_s16 = scalar_lea.hbm %s328_s0, 256 }
   0x3   :  { %s16_s13 = sshll.u32 %s255_s12, 4  ;;  %p184_p0 = scmp.ne.s32.totalorder %s328_s0, %s183_s16  ;;  %s17_s13 = int_to_ptr.vmem [resolvable:$true] %s16_s13 }
   0x4   :  { %p187_p1 = scmp.lt.u32.totalorder %s183_s16, %s328_s0 }
   0x6   :  { %p189_p2 = pnand %p187_p1, %p184_p0 }
   0x8   :  { %192 = shalt.err (!%p189_p2)
}
   0x9   :  { %s193_s21 = scalar_lea.vmem %s17_s13, 256  ;;  %p198_p4 = scmp.lt.s32.totalorder %s17_s13, %s17_s13 }
   0xa   :  { %p194_p3 = scmp.ne.s32.totalorder %s17_s13, %s193_s21  ;;  %p199_p5 = scmp.lt.s32.totalorder %s193_s21, %s193_s21 }
   0xc   :  { %p200_p6 = por %p199_p5, %p198_p4 }
   0xe   :  { %p201_p7 = pnand %p200_p6, %p194_p3 }
  0x10   :  { %204 = shalt.err (!%p201_p7)
}
  0x11   :  { %s256_s22 = smov 128   ;;  %s257_s23 = smov 8  }
  0x12   :  { %22 = dma.hbm_to_vmem [thread:$0]  %s328_s0, 256, %s17_s13, [#allocation3], %s256_s22, %s256_s22, %s257_s23  }
  0x13   :  { %s258_s26 = smov [#allocation5]   ;;  %s205_s30 = scalar_lea.hbm %s329_s1, 512 }
  0x14   :  { %s28_s27 = sshll.u32 %s258_s26, 4  ;;  %p206_p8 = scmp.ne.s32.totalorder %s329_s1, %s205_s30  ;;  %s29_s27 = int_to_ptr.vmem [resolvable:$true] %s28_s27 }
  0x15   :  { %p209_p9 = scmp.lt.u32.totalorder %s205_s30, %s329_s1 }
  0x17   :  { %p211_p10 = pnand %p209_p9, %p206_p8 }
  0x19   :  { %214 = shalt.err (!%p211_p10)
}
  0x1a   :  { %s215_s8 = scalar_lea.vmem %s29_s27, 512  ;;  %p220_p12 = scmp.lt.s32.totalorder %s29_s27, %s29_s27 }
  0x1b   :  { %p216_p11 = scmp.ne.s32.totalorder %s29_s27, %s215_s8  ;;  %p221_p13 = scmp.lt.s32.totalorder %s215_s8, %s215_s8 }
  0x1d   :  { %p222_p0 = por %p221_p13, %p220_p12 }
  0x1f   :  { %p223_p1 = pnand %p222_p0, %p216_p11 }
  0x21   :  { %226 = shalt.err (!%p223_p1)
}
  0x22   :  { %s259_s0 = smov 256   ;;  %s260_s9 = smov 16  }
  0x23   :  { %34 = dma.hbm_to_vmem [thread:$0]  %s329_s1, 512, %s29_s27, [#allocation6], %s259_s0, %s259_s0, %s260_s9  }
  0x24   :  { %249 = dma.done.wait [#allocation3], 256  }
  0x25   :  { %250 = vsyncadd [#allocation3], 4294967040 }
  0x26   :  { %251 = dma.done.wait [#allocation6], 512  }
  0x27   :  { %252 = vsyncadd [#allocation6], 4294966784  ;;  %v261_v0 = vmov 0.0   ;;  %v46_v1 = vld [vmem:[#allocation5 + $0x8] sm:$0xff]  ;;  %v48_v2 = vld [vmem:[#allocation5 + $0x18] sm:$0xff]  ;;  %vm61_vm0 = vcmask 130048   ;;  %v51_v9 = vlaneseq }
  0x28   :  { %132 = vmatprep.mubr.f32.mxu0 %v261_v0  ;;  %138 = vmatprep.mubr.f32.mxu1 %v261_v0  ;;  %v45_v3 = vld [vmem:[#allocation5] sm:$0xff]  ;;  %v169_v4 = vpack.c.bf16 %v48_v2, %v46_v1  ;;  %v47_v5 = vld [vmem:[#allocation5 + $0x10] sm:$0xff]  ;;  %v44_v8 = vld [vmem:[#allocation2 + $0x8] sm:$0xff]  ;;  %s262_s13 = smov [#allocation7]  }
  0x29   :  { %v171_v6 = vpack.c.bf16 %v47_v5, %v45_v3  ;;  %v43_v7 = vld [vmem:[#allocation2] sm:$0xff]  ;;  %v52_v10 = vshrl.u32 %v51_v9, 7  ;;  %s154_s14 = sshll.u32 %s262_s13, 4  ;;  %s155_s14 = int_to_ptr.vmem [resolvable:$true] %s154_s14 }
  0x2a   :  { %170 = vmatprep.subr.bf16.mxu0 %v169_v4  ;;  %173 = vmatprep.subr.bf16.mxu1 %v169_v4  ;;  %v49_v12 = vld [vmem:[%s330_s2] sm:$0x3]  ;;  %s227_s15 = scalar_lea.vmem %s155_s14, 512  ;;  %p232_p3 = scmp.lt.s32.totalorder %s155_s14, %s155_s14 }
  0x2b   :  { %172 = vmatpush1.bf16.msra.mxu0 %v171_v6  ;;  %174 = vmatpush1.bf16.msra.mxu1 %v171_v6  ;;  %v53_v11 = vsub.s32 0, %v52_v10  ;;  %v57_v13 = vsub.s32 1, %v52_v10  ;;  %p228_p2 = scmp.ne.s32.totalorder %s155_s14, %s227_s15  ;;  %p233_p4 = scmp.lt.s32.totalorder %s227_s15, %s227_s15 }
  0x2d   :  { %v54_v14 = vrot.slane %v49_v12, %v53_v11  ;;  %v58_v15 = vrot.slane %v49_v12, %v57_v13  ;;  %p234_p5 = por %p233_p4, %p232_p3 }
  0x2e   :  { %167 = vmatmul.mubr.msk.f32.vlgmr.msra.gmra.mrb[0].mxu0 %vm61_vm0, %v43_v7  ;;  %168 = vmatmul.mubr.msk.f32.vlgmr.msra.gmra.mrb[0].mxu1 %vm61_vm0, %v44_v8 }
  0x2f   :  { %p235_p6 = pnand %p234_p5, %p228_p2 }
 0x101   :  { %v134_v16 = vpop.f32.mrb[0].mxu0  ;;  %v140_v17 = vpop.f32.mrb[0].mxu1 }
 0x102   :  { %v135_v18 = vadd.f32 %v134_v16, %v54_v14  ;;  %v141_v19 = vadd.f32 %v140_v17, %v54_v14  ;;  %v136_v20 = vpop.f32.mrb[1].mxu0  ;;  %v142_v21 = vpop.f32.mrb[1].mxu1 }
 0x103   :  { %v137_v22 = vadd.f32 %v136_v20, %v58_v15  ;;  %v143_v23 = vadd.f32 %v142_v21, %v58_v15 }
 0x104   :  { %145 = vst [vmem:[#allocation7] sm:$0xff] %v135_v18  ;;  %147 = vst [vmem:[#allocation7 + $0x10] sm:$0xff] %v141_v19 }
 0x105   :  { %146 = vst [vmem:[#allocation7 + $0x8] sm:$0xff] %v137_v22  ;;  %148 = vst [vmem:[#allocation7 + $0x18] sm:$0xff] %v143_v23 }
 0x106   :  { %238 = shalt.err (!%p235_p6)
}
 0x107   :  { %s239_s17 = scalar_lea.hbm %s331_s3, 512 }
 0x108   :  { %p240_p7 = scmp.ne.s32.totalorder %s331_s3, %s239_s17  ;;  %p243_p8 = scmp.lt.u32.totalorder %s239_s17, %s331_s3 }
 0x10a   :  { %p245_p9 = pnand %p243_p8, %p240_p7 }
 0x10c   :  { %248 = shalt.err (!%p245_p9)
}
 0x10d   :  { %160 = dma.vmem_to_hbm [thread:$0]  %s155_s14, 512, %s331_s3, [#allocation4], %s259_s0, %s259_s0, %s260_s9  }
 0x10e   :  { %253 = dma.done.wait [#allocation4], 512  }
 0x10f   :  { %254 = vsyncadd [#allocation4], 4294966784 }
 0x110   :  { %164 = vsyncpa [#allocation3], 1 }
 0x111   :  { %165 = vsyncpa [#allocation6], 1 }
 0x112   :  { %166 = vsyncpa [#allocation4], 1 }

</bundles_post_ra>
